<compile_context>
chip_gen: v6e
topology: v6e:2x2x1
jax: 0.10.0
libtpu: 0.0.40
codegen_flags: <defaults>
</compile_context>

<pallas_src>
import jax
import jax.numpy as jnp
from jax.experimental import pallas as pl
from jax.experimental.pallas import tpu as pltpu


_NEG_BIG = -1e30  # finite stand-in for -inf on padded class columns
_VMEM_LIMIT = 48 * 1024 * 1024  # safe on v5e/v6e (128 MiB) and v7x (64 MiB/TC)


def _round_up(x, m):
    return (x + m - 1) // m * m


def _pad_dim(d):
    # Lane padding: 128 for small dims; 256-aligned otherwise (full MXU passes on v6e/v7x 256x256).
    return 128 if d <= 128 else _round_up(d, 256)


def prepare_lm_softmax_params(weight, bias, *, Hp=None, Tp=None):
    """Pre-transpose/cast/pad the Linear params. Hoist/cache this across steps (weight is static)."""
    T, H = weight.shape
    Hp = _pad_dim(H) if Hp is None else Hp
    Tp = _pad_dim(T) if Tp is None else Tp
    # Cast BEFORE pad so the padded intermediate is bf16, not f32.
    w_t = jnp.pad(weight.T.astype(jnp.bfloat16), ((0, Hp - H), (0, Tp - T)))
    # Padded class columns get a huge negative bias so they never affect max / sum-exp / argmax.
    b = jnp.pad(bias.astype(jnp.float32).reshape(1, T), ((0, 0), (0, Tp - T)),
                constant_values=_NEG_BIG)
    return w_t, b


def _make_logits_kernel(fuse_normalize):
    """Pass-1 kernel: per (row tile i, class tile j) matmul + online LSE + target gather.

    If fuse_normalize (single class tile), the scores output is already normalized log-probs and
    no finalize pass is needed."""

    def kernel(x_ref, w_ref, b_ref, tgt_ref, scores_ref, lse_ref, loss_ref,
               m_sc, l_sc, picked_sc):
        j = pl.program_id(1)
        nj = pl.num_programs(1)

        @pl.when(j == 0)
        def _():
            m_sc[...] = jnp.full(m_sc.shape, -jnp.inf, m_sc.dtype)
            l_sc[...] = jnp.zeros(l_sc.shape, l_sc.dtype)
            picked_sc[...] = jnp.zeros(picked_sc.shape, picked_sc.dtype)

        # Linear layer on the MXU: bf16 inputs, f32 accumulation; padded cols -> ~-1e30.
        logits = jnp.dot(x_ref[...], w_ref[...], preferred_element_type=jnp.float32)
        logits = logits + b_ref[...]                               # (tm, tn) f32

        # Gather logits[row, tgt[row]] for the class tile that contains the target
        # (padded class columns are never selected because targets < T <= Tp).
        tm, tn = logits.shape
        lane = jax.lax.broadcasted_iota(jnp.int32, (tm, tn), 1) + j * tn
        tgt = tgt_ref[...]                                         # (tm, 1) int32
        picked_sc[...] += jnp.sum(jnp.where(lane == tgt, logits, 0.0), axis=1, keepdims=True)

        # Online log-sum-exp over class tiles.
        m_prev = m_sc[...]
        m_new = jnp.maximum(m_prev, jnp.max(logits, axis=1, keepdims=True))
        l_sc[...] = l_sc[...] * jnp.exp(m_prev - m_new) + jnp.sum(
            jnp.exp(logits - m_new), axis=1, keepdims=True)
        m_sc[...] = m_new

        if fuse_normalize:
            # Single class tile: lse is already final -> store normalized log-probs directly.
            lse_now = m_new + jnp.log(l_sc[...])
            scores_ref[...] = (logits - lse_now).astype(scores_ref.dtype)
        else:
            # Store raw logits; the finalize kernel subtracts the per-row lse.
            scores_ref[...] = logits.astype(scores_ref.dtype)

        @pl.when(j == nj - 1)
        def _():
            lse = m_sc[...] + jnp.log(l_sc[...])                   # (tm, 1)
            lse_ref[...] = lse
            # NLLLoss(ignore_index=0, size_average=False): -sum over rows with target != 0 of
            # log_probs[row, target[row]] = picked_logit - lse.
            valid = tgt_ref[...] != 0
            contrib = -jnp.sum(jnp.where(valid, picked_sc[...] - lse, 0.0))
            loss_ref[...] = jnp.broadcast_to(contrib, loss_ref.shape).astype(loss_ref.dtype)

    return kernel


def _finalize_kernel(raw_ref, lse_ref, scores_ref):
    # scores = raw_logits - lse (per-row broadcast); lane-dense read/write.
    scores_ref[...] = (raw_ref[...].astype(jnp.float32) - lse_ref[...]).astype(scores_ref.dtype)


def lm_softmax_forward(embedding, lm_seq_tensor, weight, bias, batch_size, seq_len, *,
                       tm=256, tn=1024, scores_dtype=jnp.float32, return_padded=False,
                       prepared_params=None):
    """embedding: (batch, seq, hidden); lm_seq_tensor: (batch, seq) int targets (0 == ignore).
    weight: (target, hidden) (PyTorch nn.Linear layout), bias: (target,).

    Returns (loss, scores) matching the PyTorch module. With return_padded=True the padded
    (Np, Tp) scores are returned (valid region [:N, :T]) to avoid a full HBM copy when T is not a
    lane multiple; scores_dtype=jnp.bfloat16 halves score stores (useful on v5e)."""
    H = embedding.shape[-1]
    T = weight.shape[0]
    N = batch_size * seq_len

    Hp = _pad_dim(H)
    Tp = _pad_dim(T)

    # Row tile: multiple of 8, not far larger than the problem.
    tm = _round_up(max(8, min(tm, _round_up(N, 8))), 8)
    Np = _round_up(N, tm)
    num_row_tiles = Np // tm

    # Class tile: multiple of 128 that divides Tp.
    tn = max(128, min(_round_up(tn, 128), Tp))
    while Tp % tn != 0:
        tn -= 128
    num_class_tiles = Tp // tn
    single_class_tile = num_class_tiles == 1

    # --- wrapper-side prep: cast before pad; weight prep is hoistable via prepare_lm_softmax_params
    x = embedding.reshape(N, H).astype(jnp.bfloat16)
    x = jnp.pad(x, ((0, Np - N), (0, Hp - H)))
    if prepared_params is None:
        w_t, b = prepare_lm_softmax_params(weight, bias, Hp=Hp, Tp=Tp)
    else:
        w_t, b = prepared_params
    # Padded rows get target 0 == ignore_index, so they contribute nothing to the loss.
    # TODO(synk): targets could live in SMEM / scalar prefetch instead of a (tm,1) VMEM block.
    tgt = jnp.pad(lm_seq_tensor.reshape(N).astype(jnp.int32), (0, Np - N)).reshape(Np, 1)

    # Resident (constant-index) weight/bias when the whole vocab is one class tile -> single-buffer.
    if single_class_tile:
        w_spec = pl.BlockSpec((Hp, tn), lambda i, j: (0, j), pipeline_mode=pl.Buffered(1))
        b_spec = pl.BlockSpec((1, tn), lambda i, j: (0, j), pipeline_mode=pl.Buffered(1))
    else:
        w_spec = pl.BlockSpec((Hp, tn), lambda i, j: (0, j))
        b_spec = pl.BlockSpec((1, tn), lambda i, j: (0, j))

    cost = pl.CostEstimate(
        flops=2 * Np * Hp * Tp,
        transcendentals=Np * Tp,
        bytes_accessed=(Np * Hp * 2 + Hp * Tp * 2 + Np * Tp * jnp.dtype(scores_dtype).itemsize
                        + Np * 4),
    )

    scores_or_raw, lse, loss_partials = pl.pallas_call(
        _make_logits_kernel(single_class_tile),
        out_shape=(
            jax.ShapeDtypeStruct((Np, Tp), scores_dtype),          # scores (fused) or raw logits
            jax.ShapeDtypeStruct((Np, 1), jnp.float32),            # per-row lse
            jax.ShapeDtypeStruct((8 * num_row_tiles, 128), jnp.float32),  # per-tile loss partials
        ),
        grid_spec=pltpu.PrefetchScalarGridSpec(
            num_scalar_prefetch=0,
            grid=(num_row_tiles, num_class_tiles),
            in_specs=[
                pl.BlockSpec((tm, Hp), lambda i, j: (i, 0)),       # x rows (bf16, resident over j)
                w_spec,                                            # weight class tile (bf16)
                b_spec,                                            # bias class tile (f32)
                pl.BlockSpec((tm, 1), lambda i, j: (i, 0)),        # targets
            ],
            out_specs=[
                pl.BlockSpec((tm, tn), lambda i, j: (i, j)),       # lane-dense scores / raw logits
                pl.BlockSpec((tm, 1), lambda i, j: (i, 0)),        # lse (written on last class tile)
                pl.BlockSpec((8, 128), lambda i, j: (i, 0)),       # loss partial per row tile
            ],
            scratch_shapes=[
                pltpu.VMEM((tm, 1), jnp.float32),                  # running max
                pltpu.VMEM((tm, 1), jnp.float32),                  # running sum-exp
                pltpu.VMEM((tm, 1), jnp.float32),                  # picked target logit
            ],
        ),
        compiler_params=pltpu.CompilerParams(
            dimension_semantics=("parallel", "arbitrary"),
            vmem_limit_bytes=_VMEM_LIMIT,
        ),
        cost_estimate=cost,
    )(x, w_t, b, tgt)

    if single_class_tile:
        scores_p = scores_or_raw                                   # already normalized in-kernel
    else:
        scores_p = pl.pallas_call(
            _finalize_kernel,
            out_shape=jax.ShapeDtypeStruct((Np, Tp), scores_dtype),
            grid_spec=pltpu.PrefetchScalarGridSpec(
                num_scalar_prefetch=0,
                grid=(num_row_tiles, num_class_tiles),
                in_specs=[
                    pl.BlockSpec((tm, tn), lambda i, j: (i, j)),   # raw logits
                    pl.BlockSpec((tm, 1), lambda i, j: (i, 0)),    # lse
                ],
                out_specs=pl.BlockSpec((tm, tn), lambda i, j: (i, j)),
            ),
            compiler_params=pltpu.CompilerParams(
                dimension_semantics=("parallel", "parallel"),
                vmem_limit_bytes=_VMEM_LIMIT,
            ),
        )(scores_or_raw, lse)

    loss = jnp.sum(loss_partials[::8, 0])
    if return_padded:
        return loss, scores_p                                      # valid region is [:N, :T]
    return loss, scores_p[:N, :T]                                  # no-op copy when N==Np, T==Tp


def reference_forward(embedding, lm_seq_tensor, weight, bias, batch_size, seq_len):
    # Mirrors the kernel numerics: bf16 MXU inputs, f32 accumulation + f32 softmax/loss math.
    N = batch_size * seq_len
    x = embedding.reshape(N, -1).astype(jnp.bfloat16)
    w = weight.astype(jnp.bfloat16)
    logits = jnp.dot(x, w.T, preferred_element_type=jnp.float32) + bias.astype(jnp.float32)
    scores = jax.nn.log_softmax(logits, axis=1)
    tgt = lm_seq_tensor.reshape(N)
    picked = jnp.take_along_axis(scores, tgt[:, None], axis=1)[:, 0]
    mask = tgt != 0
    loss = -jnp.sum(jnp.where(mask, picked, 0.0))
    return loss, scores


def _run_case(batch_size, seq_len, hidden_size, target_size, key, **kwargs):
    k_emb, k_w, k_b, k_tgt = jax.random.split(key, 4)
    embedding = jax.random.normal(k_emb, (batch_size, seq_len, hidden_size), dtype=jnp.float32)
    weight = 0.1 * jax.random.normal(k_w, (target_size, hidden_size), dtype=jnp.float32)
    bias = 0.1 * jax.random.normal(k_b, (target_size,), dtype=jnp.float32)
    # Targets include index 0 (the ignore_index) so the masking path is exercised.
    lm_seq_tensor = jax.random.randint(k_tgt, (batch_size, seq_len), 0, target_size,
                                       dtype=jnp.int32)

    loss, scores = lm_softmax_forward(embedding, lm_seq_tensor, weight, bias,
                                      batch_size, seq_len, **kwargs)
    loss = jax.block_until_ready(loss)
    scores = jax.block_until_ready(scores)

    ref_loss, ref_scores = reference_forward(embedding, lm_seq_tensor, weight, bias,
                                             batch_size, seq_len)
    assert scores.shape == (batch_size * seq_len, target_size)
    assert jnp.allclose(scores, ref_scores, atol=2e-3), "scores mismatch"
    assert jnp.allclose(loss, ref_loss, atol=1e-2), "loss mismatch"


if __name__ == "__main__":
    key = jax.random.PRNGKey(0)
    k1, k2 = jax.random.split(key)

    # Case 1: small vocab -> single class tile (fused normalization, single-buffered weight).
    _run_case(2, 8, 32, 16, k1)
    # Case 2: class-tiled path -> online log-sum-exp + finalize kernel (tn=128 -> 4 class tiles).
    _run_case(2, 8, 32, 300, k2, tn=128)

    print("KERNEL_OK")
</pallas_src>

<mosaic_0001>
module attributes {stable_mosaic.version = 11 : i64} {
  func.func @kernel(%arg0: i32, %arg1: i32, %arg2: memref<16x128xbf16, #tpu.memory_space<vmem>>, %arg3: memref<128x128xbf16, #tpu.memory_space<vmem>>, %arg4: memref<1x128xf32, #tpu.memory_space<vmem>>, %arg5: memref<16x1xi32, #tpu.memory_space<vmem>>, %arg6: memref<16x128xf32, #tpu.memory_space<vmem>>, %arg7: memref<16x1xf32, #tpu.memory_space<vmem>>, %arg8: memref<8x128xf32, #tpu.memory_space<vmem>>, %arg9: memref<16x1xf32, #tpu.memory_space<vmem>>, %arg10: memref<16x1xf32, #tpu.memory_space<vmem>>, %arg11: memref<16x1xf32, #tpu.memory_space<vmem>>) attributes {dimension_semantics = [#tpu.dimension_semantics<parallel>, #tpu.dimension_semantics<arbitrary>], iteration_bounds = array<i64: 1, 1>, scalar_prefetch = 0 : i64, scratch_operands = 3 : i64, tpu.core_type = #tpu.core_type<tc>, window_params = [{transform_indices = @transform_0, window_bounds = array<i64: 16, 128>}, {pipeline_mode = #tpu.pipeline_mode<synchronous>, transform_indices = @transform_1, window_bounds = array<i64: 128, 128>}, {pipeline_mode = #tpu.pipeline_mode<synchronous>, transform_indices = @transform_2, window_bounds = array<i64: 1, 128>}, {transform_indices = @transform_3, window_bounds = array<i64: 16, 1>}, {transform_indices = @transform_4, window_bounds = array<i64: 16, 128>}, {transform_indices = @transform_5, window_bounds = array<i64: 16, 1>}, {transform_indices = @transform_6, window_bounds = array<i64: 8, 128>}]} {
    %c0_i32 = arith.constant 0 : i32
    %0 = arith.cmpi eq, %arg1, %c0_i32 : i32
    %1 = arith.extui %0 : i1 to i32
    %c0_i32_0 = arith.constant 0 : i32
    %2 = arith.cmpi ne, %1, %c0_i32_0 : i32
    scf.if %2 {
      %cst_30 = arith.constant 0xFF800000 : f32
      %48 = vector.broadcast %cst_30 : f32 to vector<16x1xf32>
      %c0_31 = arith.constant 0 : index
      %c0_32 = arith.constant 0 : index
      %49 = vector.load %arg9[%c0_31, %c0_32] : memref<16x1xf32, #tpu.memory_space<vmem>>, vector<16x1xf32>
      tpu.vector_store %arg9[%c0_31, %c0_32], %48 {strides = array<i32>} : memref<16x1xf32, #tpu.memory_space<vmem>>, vector<16x1xf32>,
      %cst_33 = arith.constant 0.000000e+00 : f32
      %50 = vector.broadcast %cst_33 : f32 to vector<16x1xf32>
      %c0_34 = arith.constant 0 : index
      %c0_35 = arith.constant 0 : index
      %51 = vector.load %arg10[%c0_34, %c0_35] : memref<16x1xf32, #tpu.memory_space<vmem>>, vector<16x1xf32>
      tpu.vector_store %arg10[%c0_34, %c0_35], %50 {strides = array<i32>} : memref<16x1xf32, #tpu.memory_space<vmem>>, vector<16x1xf32>,
      %cst_36 = arith.constant 0.000000e+00 : f32
      %52 = vector.broadcast %cst_36 : f32 to vector<16x1xf32>
      %c0_37 = arith.constant 0 : index
      %c0_38 = arith.constant 0 : index
      %53 = vector.load %arg11[%c0_37, %c0_38] : memref<16x1xf32, #tpu.memory_space<vmem>>, vector<16x1xf32>
      tpu.vector_store %arg11[%c0_37, %c0_38], %52 {strides = array<i32>} : memref<16x1xf32, #tpu.memory_space<vmem>>, vector<16x1xf32>,
    } else {
    }
    %c0 = arith.constant 0 : index
    %c0_1 = arith.constant 0 : index
    %3 = vector.load %arg2[%c0, %c0_1] : memref<16x128xbf16, #tpu.memory_space<vmem>>, vector<16x128xbf16>
    %c0_2 = arith.constant 0 : index
    %c0_3 = arith.constant 0 : index
    %4 = vector.load %arg3[%c0_2, %c0_3] : memref<128x128xbf16, #tpu.memory_space<vmem>>, vector<128x128xbf16>
    %cst = arith.constant dense<0.000000e+00> : vector<16x128xf32>
    %5 = tpu.matmul %3, %4, %cst {dimension_numbers = #tpu.dot_dimension_numbers<[1], [0], [0], [1], [0, 0, 1, 1], [], []>} : vector<16x128xbf16>, vector<128x128xbf16>, vector<16x128xf32> -> vector<16x128xf32>
    %c0_4 = arith.constant 0 : index
    %c0_5 = arith.constant 0 : index
    %6 = vector.load %arg4[%c0_4, %c0_5] : memref<1x128xf32, #tpu.memory_space<vmem>>, vector<1x128xf32>
    %7 = vector.broadcast %6 : vector<1x128xf32> to vector<16x128xf32>
    %8 = arith.addf %5, %7 : vector<16x128xf32>
    %9 = tpu.iota {dimensions = array<i32: 1>} : vector<16x128xi32>
    %c128_i32 = arith.constant 128 : i32
    %10 = arith.muli %arg1, %c128_i32 : i32
    %11 = vector.broadcast %10 : i32 to vector<16x128xi32>
    %12 = arith.addi %9, %11 : vector<16x128xi32>
    %c0_6 = arith.constant 0 : index
    %c0_7 = arith.constant 0 : index
    %13 = vector.load %arg5[%c0_6, %c0_7] : memref<16x1xi32, #tpu.memory_space<vmem>>, vector<16x1xi32>
    %c0_8 = arith.constant 0 : index
    %c0_9 = arith.constant 0 : index
    %14 = vector.load %arg11[%c0_8, %c0_9] : memref<16x1xf32, #tpu.memory_space<vmem>>, vector<16x1xf32>
    %15 = vector.broadcast %13 : vector<16x1xi32> to vector<16x128xi32>
    %16 = arith.cmpi eq, %12, %15 : vector<16x128xi32>
    %cst_10 = arith.constant 0.000000e+00 : f32
    %17 = vector.broadcast %cst_10 : f32 to vector<16x128xf32>
    %18 = arith.select %16, %8, %17 : vector<16x128xi1>, vector<16x128xf32>
    %cst_11 = arith.constant dense<0.000000e+00> : vector<16xf32>
    %19 = vector.multi_reduction <add>, %18, %cst_11 [1] : vector<16x128xf32> to vector<16xf32>
    %20 = vector.shape_cast %19 : vector<16xf32> to vector<16x1xf32>
    %21 = arith.addf %14, %20 : vector<16x1xf32>
    %c0_12 = arith.constant 0 : index
    %c0_13 = arith.constant 0 : index
    %22 = vector.load %arg11[%c0_12, %c0_13] : memref<16x1xf32, #tpu.memory_space<vmem>>, vector<16x1xf32>
    tpu.vector_store %arg11[%c0_12, %c0_13], %21 {strides = array<i32>} : memref<16x1xf32, #tpu.memory_space<vmem>>, vector<16x1xf32>,
    %c0_14 = arith.constant 0 : index
    %c0_15 = arith.constant 0 : index
    %23 = vector.load %arg9[%c0_14, %c0_15] : memref<16x1xf32, #tpu.memory_space<vmem>>, vector<16x1xf32>
    %cst_16 = arith.constant dense<0xFF800000> : vector<16xf32>
    %24 = vector.multi_reduction <maximumf>, %8, %cst_16 [1] : vector<16x128xf32> to vector<16xf32>
    %25 = vector.shape_cast %24 : vector<16xf32> to vector<16x1xf32>
    %26 = arith.maximumf %23, %25 : vector<16x1xf32>
    %c0_17 = arith.constant 0 : index
    %c0_18 = arith.constant 0 : index
    %27 = vector.load %arg10[%c0_17, %c0_18] : memref<16x1xf32, #tpu.memory_space<vmem>>, vector<16x1xf32>
    %28 = arith.subf %23, %26 : vector<16x1xf32>
    %29 = math.exp %28 : vector<16x1xf32>
    %30 = arith.mulf %27, %29 : vector<16x1xf32>
    %31 = vector.broadcast %26 : vector<16x1xf32> to vector<16x128xf32>
    %32 = arith.subf %8, %31 : vector<16x128xf32>
    %33 = math.exp %32 : vector<16x128xf32>
    %cst_19 = arith.constant dense<0.000000e+00> : vector<16xf32>
    %34 = vector.multi_reduction <add>, %33, %cst_19 [1] : vector<16x128xf32> to vector<16xf32>
    %35 = vector.shape_cast %34 : vector<16xf32> to vector<16x1xf32>
    %36 = arith.addf %30, %35 : vector<16x1xf32>
    %c0_20 = arith.constant 0 : index
    %c0_21 = arith.constant 0 : index
    %37 = vector.load %arg10[%c0_20, %c0_21] : memref<16x1xf32, #tpu.memory_space<vmem>>, vector<16x1xf32>
    tpu.vector_store %arg10[%c0_20, %c0_21], %36 {strides = array<i32>} : memref<16x1xf32, #tpu.memory_space<vmem>>, vector<16x1xf32>,
    %c0_22 = arith.constant 0 : index
    %c0_23 = arith.constant 0 : index
    %38 = vector.load %arg9[%c0_22, %c0_23] : memref<16x1xf32, #tpu.memory_space<vmem>>, vector<16x1xf32>
    tpu.vector_store %arg9[%c0_22, %c0_23], %26 {strides = array<i32>} : memref<16x1xf32, #tpu.memory_space<vmem>>, vector<16x1xf32>,
    %c0_24 = arith.constant 0 : index
    %c0_25 = arith.constant 0 : index
    %39 = vector.load %arg10[%c0_24, %c0_25] : memref<16x1xf32, #tpu.memory_space<vmem>>, vector<16x1xf32>
    %40 = math.log %39 : vector<16x1xf32>
    %41 = arith.addf %26, %40 : vector<16x1xf32>
    %42 = vector.broadcast %41 : vector<16x1xf32> to vector<16x128xf32>
    %43 = arith.subf %8, %42 : vector<16x128xf32>
    %c0_26 = arith.constant 0 : index
    %c0_27 = arith.constant 0 : index
    %44 = vector.load %arg6[%c0_26, %c0_27] : memref<16x128xf32, #tpu.memory_space<vmem>>, vector<16x128xf32>
    tpu.vector_store %arg6[%c0_26, %c0_27], %43 {strides = array<i32>} : memref<16x128xf32, #tpu.memory_space<vmem>>, vector<16x128xf32>,
    %c0_i32_28 = arith.constant 0 : i32
    %45 = arith.cmpi eq, %arg1, %c0_i32_28 : i32
    %46 = arith.extui %45 : i1 to i32
    %c0_i32_29 = arith.constant 0 : i32
    %47 = arith.cmpi ne, %46, %c0_i32_29 : i32
    scf.if %47 {
      %c0_30 = arith.constant 0 : index
      %c0_31 = arith.constant 0 : index
      %48 = vector.load %arg9[%c0_30, %c0_31] : memref<16x1xf32, #tpu.memory_space<vmem>>, vector<16x1xf32>
      %c0_32 = arith.constant 0 : index
      %c0_33 = arith.constant 0 : index
      %49 = vector.load %arg10[%c0_32, %c0_33] : memref<16x1xf32, #tpu.memory_space<vmem>>, vector<16x1xf32>
      %50 = math.log %49 : vector<16x1xf32>
      %51 = arith.addf %48, %50 : vector<16x1xf32>
      %c0_34 = arith.constant 0 : index
      %c0_35 = arith.constant 0 : index
      %52 = vector.load %arg7[%c0_34, %c0_35] : memref<16x1xf32, #tpu.memory_space<vmem>>, vector<16x1xf32>
      tpu.vector_store %arg7[%c0_34, %c0_35], %51 {strides = array<i32>} : memref<16x1xf32, #tpu.memory_space<vmem>>, vector<16x1xf32>,
      %c0_36 = arith.constant 0 : index
      %c0_37 = arith.constant 0 : index
      %53 = vector.load %arg5[%c0_36, %c0_37] : memref<16x1xi32, #tpu.memory_space<vmem>>, vector<16x1xi32>
      %c0_i32_38 = arith.constant 0 : i32
      %54 = vector.broadcast %c0_i32_38 : i32 to vector<16x1xi32>
      %55 = arith.cmpi ne, %53, %54 : vector<16x1xi32>
      %c0_39 = arith.constant 0 : index
      %c0_40 = arith.constant 0 : index
      %56 = vector.load %arg11[%c0_39, %c0_40] : memref<16x1xf32, #tpu.memory_space<vmem>>, vector<16x1xf32>
      %57 = arith.subf %56, %51 : vector<16x1xf32>
      %cst_41 = arith.constant 0.000000e+00 : f32
      %58 = vector.broadcast %cst_41 : f32 to vector<16x1xf32>
      %59 = arith.select %55, %57, %58 : vector<16x1xi1>, vector<16x1xf32>
      %60 = vector.shape_cast %59 : vector<16x1xf32> to vector<1x16x1xf32>
      %cst_42 = arith.constant dense<0.000000e+00> : vector<1xf32>
      %61 = vector.multi_reduction <add>, %60, %cst_42 [1, 2] : vector<1x16x1xf32> to vector<1xf32>
      %62 = vector.shape_cast %61 : vector<1xf32> to vector<1x1x1xf32>
      %63 = vector.extract %62[0, 0, 0] : f32 from vector<1x1x1xf32>
      %cst_43 = arith.constant 0.000000e+00 : f32
      %64 = arith.subf %cst_43, %63 : f32
      %65 = vector.broadcast %64 : f32 to vector<8x128xf32>
      %c0_44 = arith.constant 0 : index
      %c0_45 = arith.constant 0 : index
      %66 = vector.load %arg8[%c0_44, %c0_45] : memref<8x128xf32, #tpu.memory_space<vmem>>, vector<8x128xf32>
      tpu.vector_store %arg8[%c0_44, %c0_45], %65 {strides = array<i32>} : memref<8x128xf32, #tpu.memory_space<vmem>>, vector<8x128xf32>,
    } else {
    }
    return
  }
  func.func @transform_0(%arg0: i32, %arg1: i32) -> (i32, i32) {
    %c0_i32 = arith.constant 0 : i32
    %c0_i32_0 = arith.constant 0 : i32
    return %arg0, %c0_i32 : i32, i32
  }
  func.func @transform_1(%arg0: i32, %arg1: i32) -> (i32, i32) {
    %c0_i32 = arith.constant 0 : i32
    %c0_i32_0 = arith.constant 0 : i32
    return %c0_i32, %arg1 : i32, i32
  }
  func.func @transform_2(%arg0: i32, %arg1: i32) -> (i32, i32) {
    %c0_i32 = arith.constant 0 : i32
    %c0_i32_0 = arith.constant 0 : i32
    return %c0_i32, %arg1 : i32, i32
  }
  func.func @transform_3(%arg0: i32, %arg1: i32) -> (i32, i32) {
    %c0_i32 = arith.constant 0 : i32
    %c0_i32_0 = arith.constant 0 : i32
    return %arg0, %c0_i32 : i32, i32
  }
  func.func @transform_4(%arg0: i32, %arg1: i32) -> (i32, i32) {
    %c0_i32 = arith.constant 0 : i32
    return %arg0, %arg1 : i32, i32
  }
  func.func @transform_5(%arg0: i32, %arg1: i32) -> (i32, i32) {
    %c0_i32 = arith.constant 0 : i32
    %c0_i32_0 = arith.constant 0 : i32
    return %arg0, %c0_i32 : i32, i32
  }
  func.func @transform_6(%arg0: i32, %arg1: i32) -> (i32, i32) {
    %c0_i32 = arith.constant 0 : i32
    %c0_i32_0 = arith.constant 0 : i32
    return %arg0, %c0_i32 : i32, i32
  }
}

</mosaic_0001>

<bundles_post_ra>
// kernel: tpu_custom_call.1
= control target key start
LH: loop header
LB: loop body
LE: loop exit
PB: predicated region body
PF: predicated region fallthrough
CT: control target
= control target key end

     0   :  { %12 = vsyncpa [#allocation6], 0  ;;  %s599_s0 = inlined_call_operand.vmem [shape: bf16[16,128], index: 0, kind: input, shape index: {}]   ;;  %s600_s1 = inlined_call_operand.hbm [shape: bf16[128,128], index: 1, kind: input, shape index: {}]   ;;  %s601_s2 = inlined_call_operand.vmem [shape: f32[1,128], index: 2, kind: input, shape index: {}]   ;;  %s602_s3 = inlined_call_operand.vmem [shape: s32[16,1], index: 3, kind: input, shape index: {}]   ;;  %s603_s4 = inlined_call_operand.hbm [shape: f32[16,128], index: 4, kind: output, shape index: {0}]   ;;  %s604_s5 = inlined_call_operand.vmem [shape: f32[16,1], index: 5, kind: output, shape index: {1}]   ;;  %s605_s6 = inlined_call_operand.hbm [shape: f32[8,128], index: 6, kind: output, shape index: {2}]  }
   0x1   :  { %13 = vsyncpa [#allocation7], 0 }
   0x2   :  { %14 = vsyncpa [#allocation10], 0  ;;  %s478_s21 = smov [#allocation5]  }
   0x3   :  { %s22_s22 = sshll.u32 %s478_s21, 4  ;;  %s23_s22 = int_to_ptr.vmem [resolvable:$true] %s22_s22 }
   0x4   :  { %s420_s23 = scalar_lea.vmem %s23_s22, 1024  ;;  %p425_p1 = scmp.lt.s32.totalorder %s23_s22, %s23_s22 }
   0x5   :  { %p421_p0 = scmp.ne.s32.totalorder %s23_s22, %s420_s23  ;;  %p426_p2 = scmp.lt.s32.totalorder %s420_s23, %s420_s23 }
   0x7   :  { %p427_p3 = por %p426_p2, %p425_p1 }
   0x9   :  { %p428_p4 = pnand %p427_p3, %p421_p0 }
   0xb   :  { %431 = shalt.err (!%p428_p4)
}
   0xc   :  { %s479_s24 = smov 64   ;;  %s480_s25 = smov 4  }
   0xd   :  { %28 = dma.hbm_to_vmem [thread:$0]  %s600_s1, 1024, %s23_s22, [#allocation6], %s479_s24, %s479_s24, %s480_s25  }
   0xe   :  { %472 = dma.done.wait [#allocation6], 1024  }
   0xf   :  { %473 = vsyncadd [#allocation6], 4294966272  ;;  %v481_v0 = vmov 0.0   ;;  %vm482_vm0 = vmmov 0   ;;  %v391_v1 = vld [vmem:[#allocation5 + $0x38] sm:$0xff]   ;;  %v392_v2 = vld [vmem:[#allocation5 + $0x30] sm:$0xff]   ;;  %v168_v26 = vlaneseq }
  0x10   :  { %356 = vmatprep.subr.bf16.mxu0 %v481_v0  ;;  %372 = vmatprep.mubr.msk.bf16.mxu0 %vm482_vm0, %v481_v0  ;;  %v393_v3 = vld [vmem:[#allocation5 + $0x28] sm:$0xff]   ;;  %v394_v4 = vld [vmem:[#allocation5 + $0x20] sm:$0xff]   ;;  %v395_v5 = vld [vmem:[#allocation5 + $0x18] sm:$0xff]   ;;  %v483_v10 = vmov 0   ;;  %vm41_vm1 = vcmask 7168   ;;  %v484_v11 = vmov -inf  }
  0x11   :  { %357 = vmatpush3.bf16.msra.mxu0 %v391_v1  ;;  %v396_v6 = vld [vmem:[#allocation5 + $0x10] sm:$0xff]   ;;  %v397_v7 = vld [vmem:[#allocation5 + $0x8] sm:$0xff]   ;;  %v398_v8 = vld [vmem:[#allocation5] sm:$0xff]   ;;  %390 = vset.pattern.permute.xlu0 %v483_v10  ;;  %42 = vst.msk [vmem:[#allocation2] sm:$0xff] %vm41_vm1, %v484_v11  ;;  %v169_v28 = vand.u32 127, %v168_v26 }
  0x12   :  { %358 = vmatprep.subr.bf16.mxu0 %v481_v0  ;;  %v399_v9 = vld [vmem:[%s599_s0] sm:$0xff]   ;;  %389 = vset.pattern.permute.xlu1 %v483_v10  ;;  %43 = vst.msk [vmem:[#allocation2 + $0x8] sm:$0xff] %vm41_vm1, %v484_v11  ;;  %44 = vst.msk [vmem:[#allocation3] sm:$0xff] %vm41_vm1, %v481_v0  ;;  %v564_v27 = vld [vmem:[%s602_s3 + $0x8] sm:$0xff] }
  0x13   :  { %45 = vst.msk [vmem:[#allocation3 + $0x8] sm:$0xff] %vm41_vm1, %v481_v0  ;;  %46 = vst.msk [vmem:[#allocation4] sm:$0xff] %vm41_vm1, %v481_v0  ;;  %v337_v12 = vld [vmem:[%s601_s2] ss:$0 sm:$0xff]  ;;  %vm280_vm5 = vcmp.ne.s32.totalorder %v564_v27, 0 }
  0x14   :  { %47 = vst.msk [vmem:[#allocation4 + $0x8] sm:$0xff] %vm41_vm1, %v481_v0  ;;  %v548_v19 = vld [vmem:[%s602_s3] sm:$0xff] }
  0x15   :  { %359 = vmatpush3.bf16.msra.mxu0 %v392_v2  ;;  %vm279_vm4 = vcmp.ne.s32.totalorder %v548_v19, 0 }
  0x16   :  { %360 = vmatprep.subr.bf16.mxu0 %v481_v0 }
  0x18   :  { %v196_v20 = vld [vmem:[#allocation2] sm:$0xff] }
  0x19   :  { %361 = vmatpush3.bf16.msra.mxu0 %v393_v3  ;;  %v197_v23 = vld [vmem:[#allocation2 + $0x8] sm:$0xff]  ;;  %v204_v49 = vld [vmem:[#allocation3] sm:$0xff] }
  0x1a   :  { %362 = vmatprep.subr.bf16.mxu0 %v481_v0  ;;  %v175_v40 = vld [vmem:[#allocation4] sm:$0xff]  ;;  %v205_v53 = vld [vmem:[#allocation3 + $0x8] sm:$0xff] }
  0x1b   :  { %v176_v58 = vld [vmem:[#allocation4 + $0x8] sm:$0xff] }
  0x1d   :  { %363 = vmatpush3.bf16.msra.mxu0 %v394_v4 }
  0x1e   :  { %364 = vmatprep.subr.bf16.mxu0 %v481_v0 }
  0x21   :  { %365 = vmatpush3.bf16.msra.mxu0 %v395_v5 }
  0x22   :  { %366 = vmatprep.subr.bf16.mxu0 %v481_v0 }
  0x25   :  { %367 = vmatpush3.bf16.msra.mxu0 %v396_v6 }
  0x26   :  { %368 = vmatprep.subr.bf16.mxu0 %v481_v0 }
  0x29   :  { %369 = vmatpush3.bf16.msra.mxu0 %v397_v7 }
  0x2a   :  { %370 = vmatprep.subr.bf16.mxu0 %v481_v0 }
  0x2d   :  { %371 = vmatpush3.bf16.msra.mxu0 %v398_v8 }
  0x30   :  { %373 = vmatmul.mubr.bf16.vlgmr.msra.gmra.mxu0 %v399_v9 }
  0xf0   :  { %v161_v13 = vpop.f32.mrf.mxu0 }
  0xf1   :  { %v539_v14 = vadd.f32 %v337_v12, %v161_v13 }
  0xf2   :  { %v374_v15 = vpop.f32.mrf.mxu0 }
  0xf3   :  { %198 = vmax.xlane.f32.xlu0 %v539_v14 }
  0xf4   :  { %v164_v16 = vpop.f32.mrf.mxu0 }
  0xf5   :  { %v542_v17 = vadd.f32 %v337_v12, %v164_v16 }
  0xf6   :  { %v375_v18 = vpop.f32.mrf.mxu0 }
  0xf7   :  { %200 = vmax.xlane.f32.xlu0 %v542_v17 }
 0x10d   :  { %178 = vperm.xlu0 %390, %v548_v19  }
 0x17c   :  { %v199_v21 = vpop.xlane.xlu0 %198 }
 0x17d   :  { %v551_v22 = vmax.f32 %v196_v20, %v199_v21 }
 0x17f   :  { %238 = vst.msk [vmem:[#allocation2] sm:$0xff] %vm41_vm1, %v551_v22  ;;  %216 = vperm.xlu1 %389, %v551_v22   ;;  %v206_v44 = vsub.f32 %v196_v20, %v551_v22 }
 0x180   :  { %v201_v24 = vpop.xlane.xlu0 %200 }
 0x181   :  { %v556_v25 = vmax.f32 %v197_v23, %v201_v24  ;;  %v208_v45 = vmul.f32 1.442695, %v206_v44 }
 0x183   :  { %239 = vst.msk [vmem:[#allocation2 + $0x8] sm:$0xff] %vm41_vm1, %v556_v25  ;;  %221 = vperm.xlu1 %389, %v556_v25   ;;  %v207_v46 = vsub.f32 %v197_v23, %v556_v25 }
 0x185   :  { %v210_v47 = vmul.f32 1.442695, %v207_v46 }
 0x186   :  { %v265_v1 = vld [vmem:[#allocation2] sm:$0xff] }
 0x187   :  { %181 = vperm.xlu1 %389, %v564_v27  }
 0x188   :  { %v179_v29 = vpop.permute.xlu0 %178 }
 0x189   :  { %vm183_vm2 = vcmp.eq.s32.totalorder %v169_v28, %v179_v29 }
 0x18a   :  { %v185_v30 = vsel %vm183_vm2, %v539_v14, 0.0  ;;  %v266_v7 = vld [vmem:[#allocation2 + $0x8] sm:$0xff] }
 0x18b   :  { %187 = vadd.xlane.f32.xlu0 %v185_v30 }
 0x1fa   :  { %v217_v31 = vpop.permute.xlu1 %216 }
 0x1fb   :  { %v224_v32 = vsub.f32 %v539_v14, %v217_v31 }
 0x1fd   :  { %v226_v33 = vmul.f32 1.442695, %v224_v32 }
 0x1fe   :  { %v222_v34 = vpop.permute.xlu1 %221 }
 0x1ff   :  { %400 = vpow2.f32 %v226_v33  ;;  %v225_v35 = vsub.f32 %v542_v17, %v222_v34 }
 0x201   :  { %v228_v36 = vmul.f32 1.442695, %v225_v35 }
 0x202   :  { %v182_v38 = vpop.permute.xlu1 %181 }
 0x203   :  { %402 = vpow2.f32 %v228_v36  ;;  %vm184_vm3 = vcmp.eq.s32.totalorder %v169_v28, %v182_v38 }
 0x204   :  { %v186_v42 = vsel %vm184_vm3, %v542_v17, 0.0  ;;  %404 = vpow2.f32 %v208_v45 }
 0x205   :  { %406 = vpow2.f32 %v210_v47 }
 0x20c   :  { %v401_v37 = vpop.eup %400 }
 0x20d   :  { %230 = vadd.xlane.f32.xlu1 %v401_v37 }
 0x210   :  { %v403_v39 = vpop.eup %402 }
 0x211   :  { %232 = vadd.xlane.f32.xlu1 %v403_v39  ;;  %v405_v48 = vpop.eup %404 }
 0x212   :  { %v212_v50 = vmul.f32 %v405_v48, %v204_v49  ;;  %v407_v51 = vpop.eup %406 }
 0x213   :  { %v213_v55 = vmul.f32 %v407_v51, %v205_v53 }
 0x214   :  { %v188_v41 = vpop.xlane.xlu0 %187 }
 0x215   :  { %v191_v43 = vadd.f32 %v188_v41, %v175_v40  ;;  %189 = vadd.xlane.f32.xlu1 %v186_v42 }
 0x217   :  { %194 = vst.msk [vmem:[#allocation4] sm:$0xff] %vm41_vm1, %v191_v43 }
 0x21e   :  { %v281_v4 = vld [vmem:[#allocation4] sm:$0xff] }
 0x296   :  { %v231_v52 = vpop.xlane.xlu1 %230 }
 0x297   :  { %v234_v54 = vadd.f32 %v231_v52, %v212_v50 }
 0x299   :  { %236 = vst.msk [vmem:[#allocation3] sm:$0xff] %vm41_vm1, %v234_v54 }
 0x29a   :  { %v233_v56 = vpop.xlane.xlu1 %232 }
 0x29b   :  { %v235_v57 = vadd.f32 %v233_v56, %v213_v55 }
 0x29d   :  { %237 = vst.msk [vmem:[#allocation3 + $0x8] sm:$0xff] %vm41_vm1, %v235_v57 }
 0x29e   :  { %v190_v59 = vpop.xlane.xlu1 %189 }
 0x29f   :  { %v192_v60 = vadd.f32 %v190_v59, %v176_v58 }
 0x2a0   :  { %v267_v61 = vld [vmem:[#allocation3] sm:$0xff] }
 0x2a1   :  { %195 = vst.msk [vmem:[#allocation4 + $0x8] sm:$0xff] %vm41_vm1, %v192_v60  ;;  %408 = vlog2.f32 %v267_v61 }
 0x2a4   :  { %v268_v62 = vld [vmem:[#allocation3 + $0x8] sm:$0xff] }
 0x2a5   :  { %410 = vlog2.f32 %v268_v62 }
 0x2a8   :  { %v282_v9 = vld [vmem:[#allocation4 + $0x8] sm:$0xff] }
 0x2ae   :  { %v409_v63 = vpop.eup %408 }
 0x2af   :  { %v270_v0 = vmul.f32 0.6931472, %v409_v63 }
 0x2b1   :  { %v273_v2 = vadd.f32 %v270_v0, %v265_v1  ;;  %v246_v18 = vadd.f32 %v270_v0, %v551_v22 }
 0x2b2   :  { %v411_v3 = vpop.eup %410 }
 0x2b3   :  { %v272_v5 = vmul.f32 0.6931472, %v411_v3  ;;  %v283_v6 = vsub.f32 %v281_v4, %v273_v2  ;;  %275 = vst.msk [vmem:[%s604_s5] sm:$0xff] %vm41_vm1, %v273_v2 }
 0x2b5   :  { %v274_v8 = vadd.f32 %v272_v5, %v266_v7  ;;  %v285_v11 = vsel %vm279_vm4, %v283_v6, 0.0  ;;  %v247_v19 = vadd.f32 %v272_v5, %v556_v25 }
 0x2b6   :  { %v287_v13 = vsel %vm41_vm1, %v285_v11, 0.0 }
 0x2b7   :  { %276 = vst.msk [vmem:[%s604_s5 + $0x8] sm:$0xff] %vm41_vm1, %v274_v8  ;;  %v284_v10 = vsub.f32 %v282_v9, %v274_v8  ;;  %s485_s5 = smov [#allocation8]  }
 0x2b8   :  { %s307_s12 = sshll.u32 %s485_s5, 4  ;;  %s308_s12 = int_to_ptr.vmem [resolvable:$true] %s307_s12 }
 0x2b9   :  { %v286_v12 = vsel %vm280_vm5, %v284_v10, 0.0  ;;  %s432_s13 = scalar_lea.vmem %s308_s12, 256  ;;  %p437_p6 = scmp.lt.s32.totalorder %s308_s12, %s308_s12 }
 0x2ba   :  { %v288_v15 = vsel %vm41_vm1, %v286_v12, 0.0  ;;  %p433_p5 = scmp.ne.s32.totalorder %s308_s12, %s432_s13  ;;  %p438_p7 = scmp.lt.s32.totalorder %s432_s13, %s432_s13 }
 0x2bb   :  { %v289_v16 = vadd.f32 %v288_v15, %v287_v13 }
 0x2bc   :  { %p439_p8 = por %p438_p7, %p437_p6 }
 0x2bd   :  { %290 = vadd.xlane.f32.xlu1 %v289_v16 }
 0x2be   :  { %p440_p9 = pnand %p439_p8, %p433_p5 }
 0x2ce   :  { %250 = vperm.xlu1 %389, %v246_v18  }
 0x2d2   :  { %255 = vperm.xlu1 %389, %v247_v19  }
 0x346   :  { %v291_v20 = vpop.xlane.xlu1 %290 }
 0x347   :  { %v292_v21 = vrot.slane %v291_v20, 4 }
 0x349   :  { %v293_v23 = vadd.f32 %v292_v21, %v291_v20 }
 0x34a   :  { %v251_v24 = vpop.permute.xlu1 %250 }
 0x34b   :  { %v294_v26 = vrot.slane %v293_v23, 2  ;;  %v258_v27 = vsub.f32 %v539_v14, %v251_v24 }
 0x34d   :  { %260 = vst [vmem:[#allocation8] sm:$0xff] %v258_v27  ;;  %v295_v28 = vadd.f32 %v294_v26, %v293_v23 }
 0x34e   :  { %v256_v29 = vpop.permute.xlu1 %255 }
 0x34f   :  { %v259_v30 = vsub.f32 %v542_v17, %v256_v29  ;;  %v296_v22 = vrot.slane %v295_v28, 1 }
 0x351   :  { %261 = vst [vmem:[#allocation8 + $0x8] sm:$0xff] %v259_v30  ;;  %v297_v31 = vadd.f32 %v296_v22, %v295_v28 }
 0x352   :  { %443 = shalt.err (!%p440_p9)
}
 0x353   :  { %s486_s14 = smov 128   ;;  %s487_s15 = smov 8   ;;  %376 = vpush %v297_v31 }
 0x354   :  { %313 = dma.vmem_to_hbm [thread:$0]  %s308_s12, 256, %s603_s4, [#allocation7], %s486_s14, %s486_s14, %s487_s15  }
 0x355   :  { %s488_s18 = smov [#allocation9]  }
 0x356   :  { %s322_s19 = sshll.u32 %s488_s18, 4  ;;  %s323_s19 = int_to_ptr.vmem [resolvable:$true] %s322_s19 }
 0x357   :  { %s452_s22 = scalar_lea.vmem %s323_s19, 128  ;;  %p457_p11 = scmp.lt.s32.totalorder %s323_s19, %s323_s19 }
 0x358   :  { %p453_p10 = scmp.ne.s32.totalorder %s323_s19, %s452_s22  ;;  %p458_p12 = scmp.lt.s32.totalorder %s452_s22, %s452_s22 }
 0x35a   :  { %p459_p13 = por %p458_p12, %p457_p11 }
 0x35c   :  { %p460_p0 = pnand %p459_p13, %p453_p10 }
 0x384   :  { %s377_s20 = spop %376 }
 0x385   :  { %s299_s21 = ssub.f32 0.0, %s377_s20 }
 0x387   :  { %v300_v14 = vstv %s299_s21 }
 0x388   :  { %301 = vst [vmem:[#allocation9] sm:$0xff] %v300_v14 }
 0x389   :  { %463 = shalt.err (!%p460_p0)
}
 0x38a   :  { %325 = dma.vmem_to_hbm [thread:$0]  %s323_s19, 128, %s605_s6, [#allocation10]  }
 0x38b   :  { %474 = dma.done.wait [#allocation7], 256  }
 0x38c   :  { %475 = vsyncadd [#allocation7], 4294967040 }
 0x38d   :  { %476 = dma.done.wait [#allocation10], 128  }
 0x38e   :  { %477 = vsyncadd [#allocation10], 4294967168 }
 0x38f   :  { %334 = vsyncpa [#allocation6], 1 }
 0x390   :  { %335 = vsyncpa [#allocation7], 1 }
 0x391   :  { %336 = vsyncpa [#allocation10], 1 }

</bundles_post_ra>
